<compile_context>
chip_gen: v7x
topology: tpu7x:2x2x1
jax: 0.10.0
libtpu: 0.0.40
codegen_flags: <defaults>
</compile_context>

<pallas_src>
import functools

import jax
import jax.numpy as jnp
from jax import lax
from jax.experimental import pallas as pl
from jax.experimental.pallas import tpu as pltpu

LN_EPS = 1e-5


def _round_up(x, m):
    return (x + m - 1) // m * m


def _add_layernorm(h_ref, r_ref, d_valid, ln_eps):
    """residual add + LayerNorm (f32 math, affine already folded into W/b).

    Padded lanes (>= d_valid) of the inputs are zero; mean/var are computed
    over the valid columns only and padded lanes of `normed` are zeroed.
    Returns (residual_f32, normed_f32), both (TM, Dp).
    """
    h = h_ref[...].astype(jnp.float32)
    residual = h if r_ref is None else h + r_ref[...].astype(jnp.float32)

    dp = residual.shape[-1]
    inv_d = 1.0 / float(d_valid)
    mean = jnp.sum(residual, axis=-1, keepdims=True) * inv_d
    centered = residual - mean
    if d_valid != dp:  # mask padded lanes so they don't pollute the variance
        col = lax.broadcasted_iota(jnp.int32, residual.shape, 1)
        centered = jnp.where(col < d_valid, centered, 0.0)
    var = jnp.sum(centered * centered, axis=-1, keepdims=True) * inv_d
    normed = centered * lax.rsqrt(var + ln_eps)
    return residual, normed


def _final_block_fused_kernel(*refs, has_residual, d_valid, ln_eps, mm_dtype):
    """Single-shot variant: full (Dp, DOp) weight resident in VMEM.

    refs (has_residual=True):  h, r, w, b, out, res_out
    refs (has_residual=False): h,    w, b, out, res_out
    """
    if has_residual:
        h_ref, r_ref, w_ref, b_ref, out_ref, res_ref = refs
    else:
        h_ref, w_ref, b_ref, out_ref, res_ref = refs
        r_ref = None

    residual, normed = _add_layernorm(h_ref, r_ref, d_valid, ln_eps)
    res_ref[...] = residual.astype(res_ref.dtype)

    mixed = jnp.dot(normed.astype(mm_dtype), w_ref[...],
                    preferred_element_type=jnp.float32)
    out_ref[...] = (mixed + b_ref[...].astype(jnp.float32)).astype(out_ref.dtype)


def _final_block_ktiled_kernel(*refs, has_residual, d_valid, ln_eps):
    """K-tiled variant for weights too large to keep resident (e.g. v7x).

    Grid is (row_tiles, nk); the weight block is (tk, DOp) indexed by k.
    refs (has_residual=True):  h, r, w, b, out, res_out, normed_sc, acc_sc
    refs (has_residual=False): h,    w, b, out, res_out, normed_sc, acc_sc
    """
    if has_residual:
        h_ref, r_ref, w_ref, b_ref, out_ref, res_ref, normed_sc, acc_sc = refs
    else:
        h_ref, w_ref, b_ref, out_ref, res_ref, normed_sc, acc_sc = refs
        r_ref = None

    k = pl.program_id(1)
    nk = normed_sc.shape[0]
    tk = normed_sc.shape[2]

    @pl.when(k == 0)
    def _prologue():
        residual, normed = _add_layernorm(h_ref, r_ref, d_valid, ln_eps)
        res_ref[...] = residual.astype(res_ref.dtype)
        normed = normed.astype(normed_sc.dtype)
        for kk in range(nk):  # static chunking along lanes (128-aligned)
            normed_sc[kk] = normed[:, kk * tk:(kk + 1) * tk]
        acc_sc[...] = jnp.zeros_like(acc_sc)

    acc_sc[...] += jnp.dot(normed_sc[k], w_ref[...],
                           preferred_element_type=jnp.float32)

    @pl.when(k == pl.num_programs(1) - 1)
    def _epilogue():
        out_ref[...] = (acc_sc[...] +
                        b_ref[...].astype(jnp.float32)).astype(out_ref.dtype)


@functools.partial(
    jax.jit,
    static_argnames=("tile_m_max", "matmul_dtype", "max_weight_block_bytes"))
def final_block_forward(hidden_states, residual, gamma, beta, w_mix, b_mix,
                        tile_m_max=512, matmul_dtype=None,
                        max_weight_block_bytes=16 * 1024 * 1024):
    """Fused finalBlock forward.

    hidden_states: (B, L, D)
    residual:      (B, L, D) or None  (None -> residual = hidden_states)
    Returns (mixer_out (B, L, D_out), residual_out (B, L, D)).
    """
    B, L, D = hidden_states.shape
    D_out = w_mix.shape[1]
    N = B * L
    in_dtype = hidden_states.dtype
    mm_dtype = (jnp.dtype(matmul_dtype) if matmul_dtype is not None
                else jnp.dtype(jnp.float32))
    has_residual = residual is not None

    # Lane-dense / sublane-aligned padded geometry.
    Dp = _round_up(D, 128)
    DOp = _round_up(D_out, 128)
    tile_m = _round_up(max(8, min(int(tile_m_max), _round_up(N, 8))), 8)
    Np = _round_up(N, tile_m)

    # Fold LayerNorm affine into the mixer projection (one-time precompute):
    #   (normed*gamma + beta) @ W + b == normed @ (gamma[:,None]*W) + (beta@W + b)
    w32 = w_mix.astype(jnp.float32)
    w_f = gamma.astype(jnp.float32)[:, None] * w32
    b_f = beta.astype(jnp.float32) @ w32 + b_mix.astype(jnp.float32)
    w_p = jnp.pad(w_f, ((0, Dp - D), (0, DOp - D_out))).astype(mm_dtype)
    b_p = jnp.pad(b_f, ((0, DOp - D_out),)).reshape(1, DOp).astype(jnp.float32)

    h2 = jnp.pad(hidden_states.reshape(N, D), ((0, Np - N), (0, Dp - D)))
    inputs = [h2]
    if has_residual:
        r2 = jnp.pad(residual.reshape(N, D), ((0, Np - N), (0, Dp - D)))
        inputs.append(r2)
    inputs += [w_p, b_p]

    # Decide whether the weight fits as a single resident block (per-buffer
    # budget; Pallas double-buffers it). Otherwise K-tile the reduction dim.
    w_itemsize = jnp.dtype(mm_dtype).itemsize
    if Dp * DOp * w_itemsize > max_weight_block_bytes:
        tk = max(128, (max_weight_block_bytes // (DOp * w_itemsize)) // 128 * 128)
        while Dp % tk != 0:
            tk -= 128
        nk = Dp // tk
    else:
        tk, nk = Dp, 1

    n_act = 2 if has_residual else 1
    out_shapes = (jax.ShapeDtypeStruct((Np, DOp), in_dtype),
                  jax.ShapeDtypeStruct((Np, Dp), in_dtype))

    if nk == 1:
        kernel = functools.partial(_final_block_fused_kernel,
                                   has_residual=has_residual, d_valid=D,
                                   ln_eps=LN_EPS, mm_dtype=mm_dtype)
        grid = (Np // tile_m,)
        act_spec = pl.BlockSpec((tile_m, Dp), lambda i: (i, 0))
        in_specs = [act_spec] * n_act + [
            pl.BlockSpec((Dp, DOp), lambda i: (0, 0)),   # W' (resident)
            pl.BlockSpec((1, DOp), lambda i: (0, 0)),    # b'
        ]
        out_specs = [pl.BlockSpec((tile_m, DOp), lambda i: (i, 0)),
                     pl.BlockSpec((tile_m, Dp), lambda i: (i, 0))]
        scratch_shapes = []
        dim_sem = ("parallel",)
    else:
        kernel = functools.partial(_final_block_ktiled_kernel,
                                   has_residual=has_residual, d_valid=D,
                                   ln_eps=LN_EPS)
        grid = (Np // tile_m, nk)
        act_spec = pl.BlockSpec((tile_m, Dp), lambda i, k: (i, 0))
        in_specs = [act_spec] * n_act + [
            pl.BlockSpec((tk, DOp), lambda i, k: (k, 0)),  # W' K-tile
            pl.BlockSpec((1, DOp), lambda i, k: (0, 0)),   # b'
        ]
        out_specs = [pl.BlockSpec((tile_m, DOp), lambda i, k: (i, 0)),
                     pl.BlockSpec((tile_m, Dp), lambda i, k: (i, 0))]
        scratch_shapes = [pltpu.VMEM((nk, tile_m, tk), mm_dtype),   # normed
                          pltpu.VMEM((tile_m, DOp), jnp.float32)]   # f32 acc
        dim_sem = ("parallel", "arbitrary")

    # Explicit VMEM budget (double-buffered IO + scratch), capped for v7x.
    itm = jnp.dtype(in_dtype).itemsize
    vmem_est = (2 * (n_act * tile_m * Dp * itm
                     + tile_m * (Dp + DOp) * itm
                     + tk * DOp * w_itemsize + DOp * 4)
                + tile_m * Dp * w_itemsize
                + tile_m * DOp * 4)
    vmem_limit = int(min(max(int(vmem_est * 1.5), 32 << 20), 64 << 20))

    out, res_out = pl.pallas_call(
        kernel,
        out_shape=out_shapes,
        grid_spec=pltpu.PrefetchScalarGridSpec(
            num_scalar_prefetch=0,
            grid=grid,
            in_specs=in_specs,
            out_specs=out_specs,
            scratch_shapes=scratch_shapes,
        ),
        compiler_params=pltpu.CompilerParams(
            dimension_semantics=dim_sem,
            vmem_limit_bytes=vmem_limit),
    )(*inputs)

    return (out[:N, :D_out].reshape(B, L, D_out),
            res_out[:N, :D].reshape(B, L, D))


def _reference(hidden, residual, gamma, beta, w_mix, b_mix):
    res = hidden if residual is None else residual + hidden
    res32 = res.astype(jnp.float32)
    mean = jnp.mean(res32, axis=-1, keepdims=True)
    var = jnp.mean((res32 - mean) ** 2, axis=-1, keepdims=True)
    normed = (res32 - mean) / jnp.sqrt(var + LN_EPS) * gamma + beta
    out = normed @ w_mix + b_mix
    return out.astype(hidden.dtype), res


if __name__ == "__main__":
    # Small shapes consistent with the module: (B, L, d_model).
    B, L = 2, 8
    d_model, d_state, d_model_out = 32, 16, 64  # d_state unused by linear stand-in

    key = jax.random.PRNGKey(0)
    k_h, k_r, k_g, k_be, k_w, k_b = jax.random.split(key, 6)

    hidden = jax.random.normal(k_h, (B, L, d_model), dtype=jnp.float32)
    residual_in = jax.random.normal(k_r, (B, L, d_model), dtype=jnp.float32)

    # Non-trivial LayerNorm affine so the gamma/beta folding is exercised.
    gamma = 1.0 + 0.1 * jax.random.normal(k_g, (d_model,), dtype=jnp.float32)
    beta = 0.05 * jax.random.normal(k_be, (d_model,), dtype=jnp.float32)
    w_mix = jax.random.normal(k_w, (d_model, d_model_out), dtype=jnp.float32) * 0.02
    b_mix = jax.random.normal(k_b, (d_model_out,), dtype=jnp.float32) * 0.02

    # Case 1: residual provided, f32 matmul operands.
    out1, res1 = final_block_forward(hidden, residual_in, gamma, beta, w_mix, b_mix)
    jax.block_until_ready((out1, res1))
    ref_out1, ref_res1 = _reference(hidden, residual_in, gamma, beta, w_mix, b_mix)
    assert jnp.allclose(out1, ref_out1, atol=1e-4, rtol=1e-4)
    assert jnp.allclose(res1, ref_res1, atol=1e-5, rtol=1e-5)

    # Case 2: residual is None (residual = hidden_states; no zero-DMA).
    out2, res2 = final_block_forward(hidden, None, gamma, beta, w_mix, b_mix)
    jax.block_until_ready((out2, res2))
    ref_out2, ref_res2 = _reference(hidden, None, gamma, beta, w_mix, b_mix)
    assert jnp.allclose(out2, ref_out2, atol=1e-4, rtol=1e-4)
    assert jnp.allclose(res2, ref_res2, atol=1e-5, rtol=1e-5)

    # Case 3: bf16 matmul operands (MXU-friendly on v6e/v7x), looser tolerance.
    out3, res3 = final_block_forward(hidden, residual_in, gamma, beta, w_mix,
                                     b_mix, matmul_dtype=jnp.bfloat16)
    jax.block_until_ready((out3, res3))
    assert jnp.allclose(out3, ref_out1, atol=2e-2, rtol=2e-2)
    assert jnp.allclose(res3, ref_res1, atol=1e-5, rtol=1e-5)

    # Case 4: force the K-tiled weight path (used when the full weight block
    # would not fit the v7x VMEM budget) on a slightly larger d_model.
    d_model2, d_out2 = 256, 128
    k_h2, k_w2 = jax.random.split(k_h, 2)
    hidden2 = jax.random.normal(k_h2, (B, L, d_model2), dtype=jnp.float32)
    gamma2 = jnp.ones((d_model2,), dtype=jnp.float32)
    beta2 = jnp.zeros((d_model2,), dtype=jnp.float32)
    w2 = jax.random.normal(k_w2, (d_model2, d_out2), dtype=jnp.float32) * 0.02
    b2 = jnp.zeros((d_out2,), dtype=jnp.float32)
    out4, res4 = final_block_forward(hidden2, None, gamma2, beta2, w2, b2,
                                     max_weight_block_bytes=64 * 1024)
    jax.block_until_ready((out4, res4))
    ref_out4, ref_res4 = _reference(hidden2, None, gamma2, beta2, w2, b2)
    assert jnp.allclose(out4, ref_out4, atol=1e-4, rtol=1e-4)
    assert jnp.allclose(res4, ref_res4, atol=1e-5, rtol=1e-5)

    print("KERNEL_OK")
</pallas_src>

<mosaic_0001>
module attributes {stable_mosaic.version = 11 : i64} {
  func.func @_final_block_fused_kernel(%arg0: i32, %arg1: memref<16x128xf32, #tpu.memory_space<vmem>>, %arg2: memref<16x128xf32, #tpu.memory_space<vmem>>, %arg3: memref<128x128xf32, #tpu.memory_space<vmem>>, %arg4: memref<1x128xf32, #tpu.memory_space<vmem>>, %arg5: memref<16x128xf32, #tpu.memory_space<vmem>>, %arg6: memref<16x128xf32, #tpu.memory_space<vmem>>) attributes {dimension_semantics = [#tpu.dimension_semantics<parallel>], iteration_bounds = array<i64: 1>, scalar_prefetch = 0 : i64, scratch_operands = 0 : i64, tpu.core_type = #tpu.core_type<tc>, window_params = [{transform_indices = @transform_0, window_bounds = array<i64: 16, 128>}, {transform_indices = @transform_1, window_bounds = array<i64: 16, 128>}, {pipeline_mode = #tpu.pipeline_mode<synchronous>, transform_indices = @transform_2, window_bounds = array<i64: 128, 128>}, {pipeline_mode = #tpu.pipeline_mode<synchronous>, transform_indices = @transform_3, window_bounds = array<i64: 1, 128>}, {transform_indices = @transform_4, window_bounds = array<i64: 16, 128>}, {transform_indices = @transform_5, window_bounds = array<i64: 16, 128>}]} {
    %c0 = arith.constant 0 : index
    %c0_0 = arith.constant 0 : index
    %0 = vector.load %arg1[%c0, %c0_0] : memref<16x128xf32, #tpu.memory_space<vmem>>, vector<16x128xf32>
    %c0_1 = arith.constant 0 : index
    %c0_2 = arith.constant 0 : index
    %1 = vector.load %arg2[%c0_1, %c0_2] : memref<16x128xf32, #tpu.memory_space<vmem>>, vector<16x128xf32>
    %2 = arith.addf %0, %1 : vector<16x128xf32>
    %cst = arith.constant dense<0.000000e+00> : vector<16xf32>
    %3 = vector.multi_reduction <add>, %2, %cst [1] : vector<16x128xf32> to vector<16xf32>
    %4 = vector.shape_cast %3 : vector<16xf32> to vector<16x1xf32>
    %cst_3 = arith.constant 3.125000e-02 : f32
    %5 = vector.broadcast %cst_3 : f32 to vector<16x1xf32>
    %6 = arith.mulf %4, %5 : vector<16x1xf32>
    %7 = vector.broadcast %6 : vector<16x1xf32> to vector<16x128xf32>
    %8 = arith.subf %2, %7 : vector<16x128xf32>
    %9 = tpu.iota {dimensions = array<i32: 1>} : vector<16x128xi32>
    %c32_i32 = arith.constant 32 : i32
    %10 = vector.broadcast %c32_i32 : i32 to vector<16x128xi32>
    %11 = arith.cmpi slt, %9, %10 : vector<16x128xi32>
    %cst_4 = arith.constant 0.000000e+00 : f32
    %12 = vector.broadcast %cst_4 : f32 to vector<16x128xf32>
    %13 = arith.select %11, %8, %12 : vector<16x128xi1>, vector<16x128xf32>
    %14 = arith.mulf %13, %13 : vector<16x128xf32>
    %cst_5 = arith.constant dense<0.000000e+00> : vector<16xf32>
    %15 = vector.multi_reduction <add>, %14, %cst_5 [1] : vector<16x128xf32> to vector<16xf32>
    %16 = vector.shape_cast %15 : vector<16xf32> to vector<16x1xf32>
    %cst_6 = arith.constant 3.125000e-02 : f32
    %17 = vector.broadcast %cst_6 : f32 to vector<16x1xf32>
    %18 = arith.mulf %16, %17 : vector<16x1xf32>
    %cst_7 = arith.constant 9.99999974E-6 : f32
    %19 = vector.broadcast %cst_7 : f32 to vector<16x1xf32>
    %20 = arith.addf %18, %19 : vector<16x1xf32>
    %21 = math.rsqrt %20 : vector<16x1xf32>
    %22 = vector.broadcast %21 : vector<16x1xf32> to vector<16x128xf32>
    %23 = arith.mulf %13, %22 : vector<16x128xf32>
    %c0_8 = arith.constant 0 : index
    %c0_9 = arith.constant 0 : index
    %24 = vector.load %arg6[%c0_8, %c0_9] : memref<16x128xf32, #tpu.memory_space<vmem>>, vector<16x128xf32>
    tpu.vector_store %arg6[%c0_8, %c0_9], %2 {strides = array<i32>} : memref<16x128xf32, #tpu.memory_space<vmem>>, vector<16x128xf32>,
    %c0_10 = arith.constant 0 : index
    %c0_11 = arith.constant 0 : index
    %25 = vector.load %arg3[%c0_10, %c0_11] : memref<128x128xf32, #tpu.memory_space<vmem>>, vector<128x128xf32>
    %cst_12 = arith.constant dense<0.000000e+00> : vector<16x128xf32>
    %26 = tpu.matmul %23, %25, %cst_12 {dimension_numbers = #tpu.dot_dimension_numbers<[1], [0], [0], [1], [0, 0, 1, 1], [], []>} : vector<16x128xf32>, vector<128x128xf32>, vector<16x128xf32> -> vector<16x128xf32>
    %c0_13 = arith.constant 0 : index
    %c0_14 = arith.constant 0 : index
    %27 = vector.load %arg4[%c0_13, %c0_14] : memref<1x128xf32, #tpu.memory_space<vmem>>, vector<1x128xf32>
    %28 = vector.broadcast %27 : vector<1x128xf32> to vector<16x128xf32>
    %29 = arith.addf %26, %28 : vector<16x128xf32>
    %c0_15 = arith.constant 0 : index
    %c0_16 = arith.constant 0 : index
    %30 = vector.load %arg5[%c0_15, %c0_16] : memref<16x128xf32, #tpu.memory_space<vmem>>, vector<16x128xf32>
    tpu.vector_store %arg5[%c0_15, %c0_16], %29 {strides = array<i32>} : memref<16x128xf32, #tpu.memory_space<vmem>>, vector<16x128xf32>,
    return
  }
  func.func @transform_0(%arg0: i32) -> (i32, i32) {
    %c0_i32 = arith.constant 0 : i32
    %c0_i32_0 = arith.constant 0 : i32
    return %arg0, %c0_i32 : i32, i32
  }
  func.func @transform_1(%arg0: i32) -> (i32, i32) {
    %c0_i32 = arith.constant 0 : i32
    %c0_i32_0 = arith.constant 0 : i32
    return %arg0, %c0_i32 : i32, i32
  }
  func.func @transform_2(%arg0: i32) -> (i32, i32) {
    %c0_i32 = arith.constant 0 : i32
    %c0_i32_0 = arith.constant 0 : i32
    %c0_i32_1 = arith.constant 0 : i32
    return %c0_i32, %c0_i32_0 : i32, i32
  }
  func.func @transform_3(%arg0: i32) -> (i32, i32) {
    %c0_i32 = arith.constant 0 : i32
    %c0_i32_0 = arith.constant 0 : i32
    %c0_i32_1 = arith.constant 0 : i32
    return %c0_i32, %c0_i32_0 : i32, i32
  }
  func.func @transform_4(%arg0: i32) -> (i32, i32) {
    %c0_i32 = arith.constant 0 : i32
    %c0_i32_0 = arith.constant 0 : i32
    return %arg0, %c0_i32 : i32, i32
  }
  func.func @transform_5(%arg0: i32) -> (i32, i32) {
    %c0_i32 = arith.constant 0 : i32
    %c0_i32_0 = arith.constant 0 : i32
    return %arg0, %c0_i32 : i32, i32
  }
}

</mosaic_0001>

<bundles_post_ra>
// kernel: final_block_forward.1
= control target key start
LH: loop header
LB: loop body
LE: loop exit
PB: predicated region body
PF: predicated region fallthrough
CT: control target
= control target key end

     0   :  { %v33_v15 = vlaneseq  ;;  %s357_s0 = inlined_call_operand.vmem [shape: f32[16,128], index: 0, kind: input, shape index: {}]   ;;  %s358_s1 = inlined_call_operand.vmem [shape: f32[16,128], index: 1, kind: input, shape index: {}]   ;;  %s359_s5 = inlined_call_operand.vmem [shape: f32[16,128], index: 5, kind: output, shape index: {1}]   ;;  %s360_s2 = inlined_call_operand.vmem [shape: f32[128,128], index: 2, kind: input, shape index: {}]   ;;  %s361_s3 = inlined_call_operand.vmem [shape: f32[1,128], index: 3, kind: input, shape index: {}]   ;;  %s362_s4 = inlined_call_operand.vmem [shape: f32[16,128], index: 4, kind: output, shape index: {0}]  }
   0x1   :  { %v19_v0 = vld [vmem:[%s357_s0] sm:$0xff]  ;;  %v20_v2 = vld [vmem:[%s357_s0 + $0x8] sm:$0xff]  ;;  %v56_v8 = vld [vmem:[%s360_s2 + $0x10] sm:$0xff] }
   0x2   :  { %v21_v1 = vld [vmem:[%s358_s1] sm:$0xff]  ;;  %v22_v4 = vld [vmem:[%s358_s1 + $0x8] sm:$0xff]  ;;  %v57_v10 = vld [vmem:[%s360_s2 + $0x18] sm:$0xff]  ;;  %v34_v16 = vand.u32 127, %v33_v15 }
   0x3   :  { %v23_v3 = vadd.f32 %v21_v1, %v19_v0  ;;  %v24_v5 = vadd.f32 %v22_v4, %v20_v2  ;;  %v54_v6 = vld [vmem:[%s360_s2] sm:$0xff]  ;;  %v55_v7 = vld [vmem:[%s360_s2 + $0x8] sm:$0xff]  ;;  %v220_v11 = vpack.c.bf16 %v57_v10, %v56_v8  ;;  %v60_v27 = vld [vmem:[%s360_s2 + $0x30] sm:$0xff] }
   0x4   :  { %v216_v9 = vpack.c.bf16 %v55_v7, %v54_v6  ;;  %v58_v12 = vld [vmem:[%s360_s2 + $0x20] sm:$0xff]  ;;  %v59_v13 = vld [vmem:[%s360_s2 + $0x28] sm:$0xff]  ;;  %vm35_vm0 = vcmp.lt.s32.totalorder %v34_v16, 32  ;;  %v61_v28 = vld [vmem:[%s360_s2 + $0x38] sm:$0xff] }
   0x5   :  { %25 = vadd.xlane.f32.xlu0 %v23_v3  ;;  %52 = vst [vmem:[%s359_s5] sm:$0xff] %v23_v3  ;;  %53 = vst [vmem:[%s359_s5 + $0x8] sm:$0xff] %v24_v5  ;;  %v224_v14 = vpack.c.bf16 %v59_v13, %v58_v12  ;;  %v228_v29 = vpack.c.bf16 %v61_v28, %v60_v27  ;;  %v62_v30 = vld [vmem:[%s360_s2 + $0x40] sm:$0xff]  ;;  %v63_v31 = vld [vmem:[%s360_s2 + $0x48] sm:$0xff] }
   0x6   :  { %217 = vmatprep.subr.bf16.mxu0 %v216_v9  ;;  %v232_v32 = vpack.c.bf16 %v63_v31, %v62_v30  ;;  %v64_v33 = vld [vmem:[%s360_s2 + $0x50] sm:$0xff]  ;;  %v65_v34 = vld [vmem:[%s360_s2 + $0x58] sm:$0xff]  ;;  %v66_v36 = vld [vmem:[%s360_s2 + $0x60] sm:$0xff] }
   0x7   :  { %219 = vmatpush3.bf16.msra.mxu0 %v216_v9  ;;  %v236_v35 = vpack.c.bf16 %v65_v34, %v64_v33  ;;  %v67_v37 = vld [vmem:[%s360_s2 + $0x68] sm:$0xff]  ;;  %v68_v38 = vld [vmem:[%s360_s2 + $0x70] sm:$0xff]  ;;  %v69_v40 = vld [vmem:[%s360_s2 + $0x78] sm:$0xff] }
   0x8   :  { %221 = vmatprep.subr.bf16.mxu0 %v220_v11  ;;  %v240_v39 = vpack.c.bf16 %v67_v37, %v66_v36  ;;  %v244_v41 = vpack.c.bf16 %v69_v40, %v68_v38  ;;  %v162_v52 = vld [vmem:[%s361_s3] ss:$0 sm:$0xff] }
   0x9   :  { %27 = vadd.xlane.f32.xlu0 %v24_v5 }
   0xb   :  { %223 = vmatpush3.bf16.msra.mxu0 %v220_v11 }
   0xc   :  { %225 = vmatprep.subr.bf16.mxu0 %v224_v14 }
   0xf   :  { %227 = vmatpush3.bf16.msra.mxu0 %v224_v14 }
  0x10   :  { %229 = vmatprep.subr.bf16.mxu0 %v228_v29 }
  0x13   :  { %231 = vmatpush3.bf16.msra.mxu0 %v228_v29 }
  0x14   :  { %233 = vmatprep.subr.bf16.mxu0 %v232_v32 }
  0x17   :  { %235 = vmatpush3.bf16.msra.mxu0 %v232_v32 }
  0x18   :  { %237 = vmatprep.subr.bf16.mxu0 %v236_v35 }
  0x1b   :  { %239 = vmatpush3.bf16.msra.mxu0 %v236_v35 }
  0x1c   :  { %241 = vmatprep.subr.bf16.mxu0 %v240_v39 }
  0x1f   :  { %243 = vmatpush3.bf16.msra.mxu0 %v240_v39 }
  0x20   :  { %245 = vmatprep.subr.bf16.mxu0 %v244_v41 }
  0x23   :  { %247 = vmatpush3.bf16.msra.mxu0 %v244_v41 }
  0x92   :  { %v26_v17 = vpop.xlane.xlu0 %25 }
  0x93   :  { %v29_v18 = vmul.f32 0.03125, %v26_v17 }
  0x95   :  { %v31_v19 = vsub.f32 %v23_v3, %v29_v18 }
  0x96   :  { %v28_v20 = vpop.xlane.xlu0 %27 }
  0x97   :  { %v30_v21 = vmul.f32 0.03125, %v28_v20  ;;  %v36_v22 = vsel %vm35_vm0, %v31_v19, 0.0 }
  0x98   :  { %v38_v23 = vmul.f32 %v36_v22, %v36_v22 }
  0x99   :  { %v32_v24 = vsub.f32 %v24_v5, %v30_v21 }
  0x9a   :  { %40 = vadd.xlane.f32.xlu1 %v38_v23 }
  0x9b   :  { %v37_v25 = vsel %vm35_vm0, %v32_v24, 0.0 }
  0x9c   :  { %v39_v26 = vmul.f32 %v37_v25, %v37_v25 }
  0x9e   :  { %42 = vadd.xlane.f32.xlu1 %v39_v26 }
 0x127   :  { %v41_v42 = vpop.xlane.xlu1 %40 }
 0x128   :  { %v44_v43 = vmul.f32 0.03125, %v41_v42 }
 0x12a   :  { %v46_v44 = vadd.f32 1e-05, %v44_v43 }
 0x12b   :  { %v43_v45 = vpop.xlane.xlu1 %42 }
 0x12c   :  { %248 = vrsqrt.f32 %v46_v44  ;;  %v45_v46 = vmul.f32 0.03125, %v43_v45 }
 0x12e   :  { %v47_v47 = vadd.f32 1e-05, %v45_v46 }
 0x130   :  { %250 = vrsqrt.f32 %v47_v47 }
 0x136   :  { %v249_v48 = vpop.eup %248 }
 0x137   :  { %v50_v49 = vmul.f32 %v249_v48, %v36_v22 }
 0x139   :  { %213 = vmatprep.mubr.f32.mxu0 %v50_v49 }
 0x13a   :  { %v251_v50 = vpop.eup %250 }
 0x13b   :  { %v51_v51 = vmul.f32 %v251_v50, %v37_v25 }
 0x13d   :  { %214 = vmatmul.mubr.f32.vlgmr.msra.gmra.mrb[0].mxu0 %v51_v51 }
 0x210   :  { %v215_v53 = vpop.f32.mrb[0].mxu0 }
 0x211   :  { %v149_v54 = vadd.f32 %v215_v53, %v162_v52  ;;  %v143_v55 = vpop.f32.mrb[1].mxu0 }
 0x212   :  { %v144_v56 = vadd.f32 %v162_v52, %v143_v55 }
 0x213   :  { %153 = vst [vmem:[%s362_s4 + $0x8] sm:$0xff] %v149_v54 }
 0x214   :  { %152 = vst [vmem:[%s362_s4] sm:$0xff] %v144_v56 }

</bundles_post_ra>
